<compile_context>
chip_gen: v6e
topology: v6e:2x2x1
jax: 0.10.0
libtpu: 0.0.40
codegen_flags: <defaults>
</compile_context>

<pallas_src>
import jax
import jax.numpy as jnp
from jax.experimental import pallas as pl
from jax.experimental.pallas import tpu as pltpu


def sop_head_kernel(x_ref, w1_ref, b1_ref, w2_ref, b2_ref, out_ref, acc_ref):
    """One (batch tile i, W1 output slab j) step of the fused SOP head.

    x_ref  : [tb, D]   f32   pooled_output tile (resident across j, streams with i)
    w1_ref : [D, tn]   bf16  pooling_layer weight slab (in, out), streams with j
    b1_ref : [1, tn]   f32   pooling_layer bias slab
    w2_ref : [tn, 1]   f32   classifier weight slab (column)
    b2_ref : [1]       f32   classifier bias (SMEM scalar)
    out_ref: [tb, 1]   f32   logits for this batch tile (written at j == last)
    acc_ref: [tb, 1]   f32   VMEM logit accumulator carried across j
    """
    j = pl.program_id(1)

    @pl.when(j == 0)
    def _init():
        acc_ref[...] = jnp.zeros_like(acc_ref)

    # In-kernel bf16 cast of the streamed f32 activation tile (avoids a
    # separate XLA cast pass over x in HBM); bf16 MXU matmul, f32 accumulation.
    x_bf = x_ref[...].astype(jnp.bfloat16)
    h = jnp.dot(x_bf, w1_ref[...], preferred_element_type=jnp.float32)
    h = jnp.tanh(h + b1_ref[...])

    # TODO(synk): Dropout(p=0.2) is identity in eval mode; training-mode RNG
    # masking (pltpu.prng_seed + prng_random_bits) is intentionally omitted.

    # Classifier partial sum: canonical [tb, tn] @ [tn, 1] on the MXU (no
    # transposed copy of h), accumulated in f32 across the j axis.
    acc_ref[...] += jnp.dot(h, w2_ref[...], preferred_element_type=jnp.float32)

    @pl.when(j == pl.num_programs(1) - 1)
    def _finalize():
        out_ref[...] = (acc_ref[...] + b2_ref[0]).astype(out_ref.dtype)


def _round_up(x, m):
    return ((x + m - 1) // m) * m


def _choose_batch_tile(B, d_pad):
    """Batch tile: VMEM-bounded, megacore-aware, padding-waste-aware."""
    # Upper bound from VMEM (f32 x tile double-buffered + f32 h temp).
    if d_pad <= 1024:
        tb_max = 1024          # small D: big tiles to amortize per-step overhead
    elif d_pad <= 4096:
        tb_max = 512
    else:
        tb_max = 256
    if B < 256:
        return _round_up(B, 8)                       # single tile
    if B <= tb_max:
        # Split into >= 2 tiles so both v7x TensorCores get work.
        return _round_up(pl.cdiv(B, 2), 128)
    # Large batch: pick the candidate <= tb_max that minimizes padding waste.
    best_tb, best_waste = tb_max, None
    for cand in sorted({tb_max, (tb_max * 3) // 4, tb_max // 2, 256, 128},
                       reverse=True):
        if cand < 128 or cand > tb_max or cand % 128 != 0:
            continue
        waste = _round_up(B, cand) - B
        if best_waste is None or waste < best_waste:
            best_tb, best_waste = cand, waste
    return best_tb


def _choose_n_tile(d_pad):
    """W1 output-column slab width: stream W1 when it would not be tiny."""
    if d_pad * d_pad * 2 <= (8 << 20):   # whole bf16 W1 <= 8 MiB -> one slab
        return d_pad
    tn = max(256, (((4 << 20) // (2 * d_pad)) // 256) * 256)
    while d_pad % tn != 0:               # d_pad is a multiple of 256 -> terminates
        tn -= 256
    return max(tn, 256)


def sop_head_forward(pooled_output, w_pool, b_pool, w_cls, b_cls):
    """pooled_output: [B, D] f32; w_pool: [D, D] stored (in, out); b_pool: [D];
    w_cls: [D, 1] stored (in, out); b_cls: [1].  Returns logits [B, 1] (f32)."""
    B, D = pooled_output.shape

    # MXU-friendly feature padding (zeros: contributes nothing to either matmul).
    d_pad = _round_up(D, 256)
    tb = _choose_batch_tile(B, d_pad)
    b_pad = _round_up(B, tb)
    tn = _choose_n_tile(d_pad)

    x = pooled_output.astype(jnp.float32)
    if b_pad != B or d_pad != D:
        x = jnp.pad(x, ((0, b_pad - B), (0, d_pad - D)))

    w1 = w_pool.astype(jnp.bfloat16)             # one-time weight cast
    b1 = b_pool.astype(jnp.float32).reshape(1, D)
    w2 = w_cls.astype(jnp.float32).reshape(D, 1)
    if d_pad != D:
        w1 = jnp.pad(w1, ((0, d_pad - D), (0, d_pad - D)))
        b1 = jnp.pad(b1, ((0, 0), (0, d_pad - D)))
        w2 = jnp.pad(w2, ((0, d_pad - D), (0, 0)))
    b2 = b_cls.reshape(1).astype(jnp.float32)

    grid = (b_pad // tb, d_pad // tn)

    # Explicit VMEM budget from the real (double-buffered) tile footprint.
    vmem_est = (
        2 * tb * d_pad * 4        # x tile, f32, double-buffered
        + 2 * d_pad * tn * 2      # W1 slab, bf16, double-buffered
        + 2 * 8 * tn * 4          # b1 slab (sublane-padded)
        + 2 * tn * 128 * 4        # w2 slab (lane-padded)
        + 2 * tb * 128 * 4        # out block (lane-padded)
        + tb * 128 * 4            # acc scratch (lane-padded)
        + 2 * tb * tn * 4         # h temporary (+ headroom)
    )
    vmem_limit = int(min(max(vmem_est + (2 << 20), 16 << 20), 48 << 20))

    out = pl.pallas_call(
        sop_head_kernel,
        out_shape=jax.ShapeDtypeStruct((b_pad, 1), jnp.float32),
        grid=grid,
        in_specs=[
            pl.BlockSpec((tb, d_pad), lambda i, j: (i, 0)),      # x: full K per tile
            pl.BlockSpec((d_pad, tn), lambda i, j: (0, j)),      # W1: streams N slabs
            pl.BlockSpec((1, tn), lambda i, j: (0, j)),          # b1 slab
            pl.BlockSpec((tn, 1), lambda i, j: (j, 0)),          # w2 column slab
            pl.BlockSpec(memory_space=pltpu.MemorySpace.SMEM),   # b2 scalar
        ],
        out_specs=pl.BlockSpec((tb, 1), lambda i, j: (i, 0)),
        scratch_shapes=[pltpu.VMEM((tb, 1), jnp.float32)],
        compiler_params=pltpu.CompilerParams(
            dimension_semantics=("parallel", "arbitrary"),
            vmem_limit_bytes=vmem_limit,
        ),
    )(x, w1, b1, w2, b2)

    return out[:B]


def reference_forward(pooled_output, w_pool, b_pool, w_cls, b_cls):
    # Matches the kernel's numerics: bf16-rounded x / W1, f32 accumulation,
    # f32 tanh and f32 classifier.
    x32 = pooled_output.astype(jnp.bfloat16).astype(jnp.float32)
    w1_32 = w_pool.astype(jnp.bfloat16).astype(jnp.float32)
    h = jnp.tanh(x32 @ w1_32 + b_pool)
    return h @ w_cls + b_cls


if __name__ == "__main__":
    # Small shapes consistent with the module: batch=8, d_model=32.
    B, D = 8, 32
    key = jax.random.PRNGKey(0)
    k_x, k_w1, k_b1, k_w2, k_b2 = jax.random.split(key, 5)

    pooled_output = jax.random.normal(k_x, (B, D), dtype=jnp.float32)

    # Deterministic parameter init (PyTorch nn.Linear-style uniform bounds),
    # stored (in, out) so forward is x @ W + b.
    bound1 = 1.0 / (D ** 0.5)
    w_pool = jax.random.uniform(k_w1, (D, D), minval=-bound1, maxval=bound1,
                                dtype=jnp.float32)
    b_pool = jax.random.uniform(k_b1, (D,), minval=-bound1, maxval=bound1,
                                dtype=jnp.float32)
    w_cls = jax.random.uniform(k_w2, (D, 1), minval=-bound1, maxval=bound1,
                               dtype=jnp.float32)
    b_cls = jax.random.uniform(k_b2, (1,), minval=-bound1, maxval=bound1,
                               dtype=jnp.float32)

    logits = sop_head_forward(pooled_output, w_pool, b_pool, w_cls, b_cls)
    logits = jax.block_until_ready(logits)

    ref = reference_forward(pooled_output, w_pool, b_pool, w_cls, b_cls)
    assert logits.shape == (B, 1), logits.shape
    max_err = float(jnp.max(jnp.abs(logits - ref)))
    assert max_err < 1e-3, max_err

    print("KERNEL_OK")
</pallas_src>

<mosaic_0001>
module attributes {stable_mosaic.version = 11 : i64} {
  func.func @sop_head_kernel(%arg0: i32, %arg1: i32, %arg2: memref<8x256xf32, #tpu.memory_space<vmem>>, %arg3: memref<256x256xbf16, #tpu.memory_space<vmem>>, %arg4: memref<1x256xf32, #tpu.memory_space<vmem>>, %arg5: memref<256x1xf32, #tpu.memory_space<vmem>>, %arg6: memref<1xf32, #tpu.memory_space<smem>>, %arg7: memref<8x1xf32, #tpu.memory_space<vmem>>, %arg8: memref<8x1xf32, #tpu.memory_space<vmem>>) attributes {dimension_semantics = [#tpu.dimension_semantics<parallel>, #tpu.dimension_semantics<arbitrary>], iteration_bounds = array<i64: 1, 1>, scalar_prefetch = 0 : i64, scratch_operands = 1 : i64, tpu.core_type = #tpu.core_type<tc>, window_params = [{transform_indices = @transform_0, window_bounds = array<i64: 8, 256>}, {transform_indices = @transform_1, window_bounds = array<i64: 256, 256>}, {transform_indices = @transform_2, window_bounds = array<i64: 1, 256>}, {transform_indices = @transform_3, window_bounds = array<i64: 256, 1>}, {transform_indices = @transform_4, window_bounds = array<i64: 1>}, {transform_indices = @transform_5, window_bounds = array<i64: 8, 1>}]} {
    %c0_i32 = arith.constant 0 : i32
    %0 = arith.cmpi eq, %arg1, %c0_i32 : i32
    %1 = arith.extui %0 : i1 to i32
    %c0_i32_0 = arith.constant 0 : i32
    %2 = arith.cmpi ne, %1, %c0_i32_0 : i32
    scf.if %2 {
      %cst_15 = arith.constant 0.000000e+00 : f32
      %19 = vector.broadcast %cst_15 : f32 to vector<8x1xf32>
      %c0_16 = arith.constant 0 : index
      %c0_17 = arith.constant 0 : index
      %20 = vector.load %arg8[%c0_16, %c0_17] : memref<8x1xf32, #tpu.memory_space<vmem>>, vector<8x1xf32>
      tpu.vector_store %arg8[%c0_16, %c0_17], %19 {strides = array<i32>} : memref<8x1xf32, #tpu.memory_space<vmem>>, vector<8x1xf32>,
    } else {
    }
    %c0 = arith.constant 0 : index
    %c0_1 = arith.constant 0 : index
    %3 = vector.load %arg2[%c0, %c0_1] : memref<8x256xf32, #tpu.memory_space<vmem>>, vector<8x256xf32>
    %4 = arith.truncf %3 : vector<8x256xf32> to vector<8x256xbf16>
    %c0_2 = arith.constant 0 : index
    %c0_3 = arith.constant 0 : index
    %5 = vector.load %arg3[%c0_2, %c0_3] : memref<256x256xbf16, #tpu.memory_space<vmem>>, vector<256x256xbf16>
    %cst = arith.constant dense<0.000000e+00> : vector<8x256xf32>
    %6 = tpu.matmul %4, %5, %cst {dimension_numbers = #tpu.dot_dimension_numbers<[1], [0], [0], [1], [0, 0, 1, 1], [], []>} : vector<8x256xbf16>, vector<256x256xbf16>, vector<8x256xf32> -> vector<8x256xf32>
    %c0_4 = arith.constant 0 : index
    %c0_5 = arith.constant 0 : index
    %7 = vector.load %arg4[%c0_4, %c0_5] : memref<1x256xf32, #tpu.memory_space<vmem>>, vector<1x256xf32>
    %8 = vector.broadcast %7 : vector<1x256xf32> to vector<8x256xf32>
    %9 = arith.addf %6, %8 : vector<8x256xf32>
    %10 = math.tanh %9 : vector<8x256xf32>
    %c0_6 = arith.constant 0 : index
    %c0_7 = arith.constant 0 : index
    %11 = vector.load %arg8[%c0_6, %c0_7] : memref<8x1xf32, #tpu.memory_space<vmem>>, vector<8x1xf32>
    %c0_8 = arith.constant 0 : index
    %c0_9 = arith.constant 0 : index
    %12 = vector.load %arg5[%c0_8, %c0_9] : memref<256x1xf32, #tpu.memory_space<vmem>>, vector<256x1xf32>
    %cst_10 = arith.constant dense<0.000000e+00> : vector<8x1xf32>
    %13 = tpu.matmul %10, %12, %cst_10 {dimension_numbers = #tpu.dot_dimension_numbers<[1], [0], [0], [1], [0, 0, 1, 1], [], []>} : vector<8x256xf32>, vector<256x1xf32>, vector<8x1xf32> -> vector<8x1xf32>
    %14 = arith.addf %11, %13 : vector<8x1xf32>
    %c0_11 = arith.constant 0 : index
    %c0_12 = arith.constant 0 : index
    %15 = vector.load %arg8[%c0_11, %c0_12] : memref<8x1xf32, #tpu.memory_space<vmem>>, vector<8x1xf32>
    tpu.vector_store %arg8[%c0_11, %c0_12], %14 {strides = array<i32>} : memref<8x1xf32, #tpu.memory_space<vmem>>, vector<8x1xf32>,
    %c0_i32_13 = arith.constant 0 : i32
    %16 = arith.cmpi eq, %arg1, %c0_i32_13 : i32
    %17 = arith.extui %16 : i1 to i32
    %c0_i32_14 = arith.constant 0 : i32
    %18 = arith.cmpi ne, %17, %c0_i32_14 : i32
    scf.if %18 {
      %c0_15 = arith.constant 0 : index
      %c0_16 = arith.constant 0 : index
      %19 = vector.load %arg8[%c0_15, %c0_16] : memref<8x1xf32, #tpu.memory_space<vmem>>, vector<8x1xf32>
      %c0_17 = arith.constant 0 : index
      %20 = memref.load %arg6[%c0_17] : memref<1xf32, #tpu.memory_space<smem>>
      %21 = vector.broadcast %20 : f32 to vector<8x1xf32>
      %22 = arith.addf %19, %21 : vector<8x1xf32>
      %c0_18 = arith.constant 0 : index
      %c0_19 = arith.constant 0 : index
      %23 = vector.load %arg7[%c0_18, %c0_19] : memref<8x1xf32, #tpu.memory_space<vmem>>, vector<8x1xf32>
      tpu.vector_store %arg7[%c0_18, %c0_19], %22 {strides = array<i32>} : memref<8x1xf32, #tpu.memory_space<vmem>>, vector<8x1xf32>,
    } else {
    }
    return
  }
  func.func @transform_0(%arg0: i32, %arg1: i32) -> (i32, i32) {
    %c0_i32 = arith.constant 0 : i32
    %c0_i32_0 = arith.constant 0 : i32
    return %arg0, %c0_i32 : i32, i32
  }
  func.func @transform_1(%arg0: i32, %arg1: i32) -> (i32, i32) {
    %c0_i32 = arith.constant 0 : i32
    %c0_i32_0 = arith.constant 0 : i32
    return %c0_i32, %arg1 : i32, i32
  }
  func.func @transform_2(%arg0: i32, %arg1: i32) -> (i32, i32) {
    %c0_i32 = arith.constant 0 : i32
    %c0_i32_0 = arith.constant 0 : i32
    return %c0_i32, %arg1 : i32, i32
  }
  func.func @transform_3(%arg0: i32, %arg1: i32) -> (i32, i32) {
    %c0_i32 = arith.constant 0 : i32
    %c0_i32_0 = arith.constant 0 : i32
    return %arg1, %c0_i32 : i32, i32
  }
  func.func @transform_4(%arg0: i32, %arg1: i32) -> i32 {
    %c0_i32 = arith.constant 0 : i32
    %c0_i32_0 = arith.constant 0 : i32
    return %c0_i32 : i32
  }
  func.func @transform_5(%arg0: i32, %arg1: i32) -> (i32, i32) {
    %c0_i32 = arith.constant 0 : i32
    %c0_i32_0 = arith.constant 0 : i32
    return %arg0, %c0_i32 : i32, i32
  }
}

</mosaic_0001>

<bundles_post_ra>
// kernel: tpu_custom_call.1
= control target key start
LH: loop header
LB: loop body
LE: loop exit
PB: predicated region body
PF: predicated region fallthrough
CT: control target
= control target key end

     0   :  { %11 = vsyncpa [#allocation5], 0  ;;  %s552_s18 = smov [#allocation4]   ;;  %s788_s0 = inlined_call_operand.hbm [shape: f32[8,256], index: 0, kind: input, shape index: {}]   ;;  %s789_s1 = inlined_call_operand.vmem [shape: bf16[256,256], index: 1, kind: input, shape index: {}]   ;;  %s790_s2 = inlined_call_operand.vmem [shape: f32[1,256], index: 2, kind: input, shape index: {}]   ;;  %s791_s3 = inlined_call_operand.vmem [shape: f32[256,1], index: 3, kind: input, shape index: {}]   ;;  %s792_s4 = inlined_call_operand.<no memory space> [shape: f32[1], index: 4, kind: input, shape index: {}]   ;;  %s793_s5 = inlined_call_operand.vmem [shape: f32[8,1], index: 5, kind: output, shape index: {}]  }
   0x1   :  { %s18_s19 = sshll.u32 %s552_s18, 4  ;;  %s19_s19 = int_to_ptr.vmem [resolvable:$true] %s18_s19 }
   0x2   :  { %s538_s20 = scalar_lea.vmem %s19_s19, 256  ;;  %p543_p1 = scmp.lt.s32.totalorder %s19_s19, %s19_s19 }
   0x3   :  { %p539_p0 = scmp.ne.s32.totalorder %s19_s19, %s538_s20  ;;  %p544_p2 = scmp.lt.s32.totalorder %s538_s20, %s538_s20 }
   0x5   :  { %p545_p3 = por %p544_p2, %p543_p1 }
   0x7   :  { %p546_p4 = pnand %p545_p3, %p539_p0 }
   0x9   :  { %549 = shalt.err (!%p546_p4)
}
   0xa   :  { %21 = dma.hbm_to_vmem [thread:$0]  %s788_s0, 256, %s19_s19, [#allocation5]  }
   0xb   :  { %550 = dma.done.wait [#allocation5], 256  }
   0xc   :  { %551 = vsyncadd [#allocation5], 4294967040  ;;  %v478_v0 = vld [vmem:[%s789_s1 + $0x74] ss:$8 sps:$4 sm:$0xff]   ;;  %v480_v1 = vld [vmem:[%s789_s1 + $0x70] ss:$8 sps:$4 sm:$0xff]  }
   0xd   :  { %247 = vmatprep.subr.bf16.mxu0 %v478_v0  ;;  %v481_v2 = vld [vmem:[%s789_s1 + $0x64] ss:$8 sps:$4 sm:$0xff]   ;;  %v483_v3 = vld [vmem:[%s789_s1 + $0x60] ss:$8 sps:$4 sm:$0xff]   ;;  %v484_v4 = vld [vmem:[%s789_s1 + $0x54] ss:$8 sps:$4 sm:$0xff]  }
   0xe   :  { %248 = vmatpush1.bf16.msra.mxu0 %v480_v1  ;;  %v486_v5 = vld [vmem:[%s789_s1 + $0x50] ss:$8 sps:$4 sm:$0xff]   ;;  %v487_v6 = vld [vmem:[%s789_s1 + $0x44] ss:$8 sps:$4 sm:$0xff]   ;;  %v489_v7 = vld [vmem:[%s789_s1 + $0x40] ss:$8 sps:$4 sm:$0xff]  }
   0xf   :  { %249 = vmatprep.subr.bf16.mxu0 %v481_v2  ;;  %v490_v8 = vld [vmem:[%s789_s1 + $0x34] ss:$8 sps:$4 sm:$0xff]   ;;  %v492_v9 = vld [vmem:[%s789_s1 + $0x30] ss:$8 sps:$4 sm:$0xff]   ;;  %v493_v10 = vld [vmem:[%s789_s1 + $0x24] ss:$8 sps:$4 sm:$0xff]  }
  0x10   :  { %v495_v11 = vld [vmem:[%s789_s1 + $0x20] ss:$8 sps:$4 sm:$0xff]   ;;  %v496_v12 = vld [vmem:[%s789_s1 + $0x14] ss:$8 sps:$4 sm:$0xff]   ;;  %v498_v17 = vld [vmem:[%s789_s1 + $0x10] ss:$8 sps:$4 sm:$0xff]  }
  0x11   :  { %v40_v13 = vld [vmem:[#allocation4 + $0x8] sm:$0xff]  ;;  %v322_v15 = vld [vmem:[%s791_s3 + $0xf8] sm:$0xff]  ;;  %v499_v19 = vld [vmem:[%s789_s1 + $0x4] ss:$8 sps:$4 sm:$0xff]   ;;  %vm37_vm0 = vcmask 7168  }
  0x12   :  { %250 = vmatpush1.bf16.msra.mxu0 %v483_v3  ;;  %v42_v14 = vpack.c.bf16 %v40_v13, %v40_v13  ;;  %v306_v16 = vld [vmem:[%s791_s3 + $0x78] sm:$0xff]  ;;  %441 = vmatprep.subr.mxu1 %v322_v15  ;;  %v321_v18 = vld [vmem:[%s791_s3 + $0xf0] sm:$0xff]  ;;  %v320_v21 = vld [vmem:[%s791_s3 + $0xe8] sm:$0xff] }
  0x13   :  { %251 = vmatprep.subr.bf16.mxu0 %v484_v4  ;;  %v305_v20 = vld [vmem:[%s791_s3 + $0x70] sm:$0xff]  ;;  %442 = vmatpush3.msra.mxu1 %v306_v16  ;;  %v304_v22 = vld [vmem:[%s791_s3 + $0x68] sm:$0xff]  ;;  %v319_v24 = vld [vmem:[%s791_s3 + $0xe0] sm:$0xff]  ;;  %v77_v4 = vlaneseq }
  0x14   :  { %279 = vmatprep.mubr.bf16.mxu0 %v42_v14  ;;  %443 = vmatprep.subr.mxu1 %v321_v18  ;;  %v501_v23 = vld [vmem:[%s789_s1] ss:$8 sps:$4 sm:$0xff]   ;;  %v502_v25 = vld [vmem:[%s789_s1 + $0xf4] ss:$8 sps:$4 sm:$0xff]   ;;  %v504_v29 = vld [vmem:[%s789_s1 + $0xf0] ss:$8 sps:$4 sm:$0xff]  }
  0x15   :  { %444 = vmatpush3.msra.mxu1 %v305_v20  ;;  %v303_v26 = vld [vmem:[%s791_s3 + $0x60] sm:$0xff]  ;;  %v318_v27 = vld [vmem:[%s791_s3 + $0xd8] sm:$0xff]  ;;  %v317_v30 = vld [vmem:[%s791_s3 + $0xd0] sm:$0xff] }
  0x16   :  { %252 = vmatpush1.bf16.msra.mxu0 %v486_v5  ;;  %445 = vmatprep.subr.mxu1 %v320_v21  ;;  %v302_v28 = vld [vmem:[%s791_s3 + $0x58] sm:$0xff]  ;;  %v505_v31 = vld [vmem:[%s789_s1 + $0xe4] ss:$8 sps:$4 sm:$0xff]   ;;  %v301_v32 = vld [vmem:[%s791_s3 + $0x50] sm:$0xff]  ;;  %v78_v5 = vshrl.u32 %v77_v4, 7 }
  0x17   :  { %253 = vmatprep.subr.bf16.mxu0 %v487_v6  ;;  %446 = vmatpush3.msra.mxu1 %v304_v22  ;;  %v507_v33 = vld [vmem:[%s789_s1 + $0xe0] ss:$8 sps:$4 sm:$0xff]   ;;  %v508_v34 = vld [vmem:[%s789_s1 + $0xd4] ss:$8 sps:$4 sm:$0xff]   ;;  %v510_v35 = vld [vmem:[%s789_s1 + $0xd0] ss:$8 sps:$4 sm:$0xff]  }
  0x18   :  { %447 = vmatprep.subr.mxu1 %v319_v24  ;;  %v511_v36 = vld [vmem:[%s789_s1 + $0xc4] ss:$8 sps:$4 sm:$0xff]   ;;  %v513_v37 = vld [vmem:[%s789_s1 + $0xc0] ss:$8 sps:$4 sm:$0xff]   ;;  %v514_v38 = vld [vmem:[%s789_s1 + $0xb4] ss:$8 sps:$4 sm:$0xff]  }
  0x19   :  { %448 = vmatpush3.msra.mxu1 %v303_v26  ;;  %v516_v39 = vld [vmem:[%s789_s1 + $0xb0] ss:$8 sps:$4 sm:$0xff]   ;;  %v517_v40 = vld [vmem:[%s789_s1 + $0xa4] ss:$8 sps:$4 sm:$0xff]   ;;  %v519_v41 = vld [vmem:[%s789_s1 + $0xa0] ss:$8 sps:$4 sm:$0xff]  }
  0x1a   :  { %254 = vmatpush1.bf16.msra.mxu0 %v489_v7  ;;  %449 = vmatprep.subr.mxu1 %v318_v27  ;;  %v520_v42 = vld [vmem:[%s789_s1 + $0x94] ss:$8 sps:$4 sm:$0xff]   ;;  %v522_v43 = vld [vmem:[%s789_s1 + $0x90] ss:$8 sps:$4 sm:$0xff]   ;;  %v523_v44 = vld [vmem:[%s789_s1 + $0x84] ss:$8 sps:$4 sm:$0xff]  }
  0x1b   :  { %255 = vmatprep.subr.bf16.mxu0 %v490_v8  ;;  %450 = vmatpush3.msra.mxu1 %v302_v28  ;;  %v525_v45 = vld [vmem:[%s789_s1 + $0x80] ss:$8 sps:$4 sm:$0xff]   ;;  %v314_v52 = vld [vmem:[%s791_s3 + $0xb8] sm:$0xff]  ;;  %v313_v54 = vld [vmem:[%s791_s3 + $0xb0] sm:$0xff]  ;;  %v79_v6 = vsub.s32 0, %v78_v5  ;;  %v83_v8 = vsub.s32 1, %v78_v5 }
  0x1c   :  { %451 = vmatprep.subr.mxu1 %v317_v30  ;;  %v39_v46 = vld [vmem:[#allocation4] sm:$0xff]  ;;  %v315_v50 = vld [vmem:[%s791_s3 + $0xc0] sm:$0xff]  ;;  %v298_v53 = vld [vmem:[%s791_s3 + $0x38] sm:$0xff] }
  0x1d   :  { %452 = vmatpush3.msra.mxu1 %v301_v32  ;;  %v41_v47 = vpack.c.bf16 %v39_v46, %v39_v46  ;;  %v316_v48 = vld [vmem:[%s791_s3 + $0xc8] sm:$0xff]  ;;  %v299_v51 = vld [vmem:[%s791_s3 + $0x40] sm:$0xff]  ;;  %v297_v55 = vld [vmem:[%s791_s3 + $0x30] sm:$0xff] }
  0x1e   :  { %256 = vmatpush1.bf16.msra.mxu0 %v492_v9  ;;  %453 = vmatprep.subr.mxu1 %v316_v48  ;;  %v300_v49 = vld [vmem:[%s791_s3 + $0x48] sm:$0xff]  ;;  %v311_v58 = vld [vmem:[%s791_s3 + $0xa0] sm:$0xff]  ;;  %v310_v60 = vld [vmem:[%s791_s3 + $0x98] sm:$0xff] }
  0x1f   :  { %257 = vmatprep.subr.bf16.mxu0 %v493_v10  ;;  %454 = vmatpush3.msra.mxu1 %v300_v49  ;;  %v312_v56 = vld [vmem:[%s791_s3 + $0xa8] sm:$0xff]  ;;  %v295_v59 = vld [vmem:[%s791_s3 + $0x20] sm:$0xff]  ;;  %v294_v61 = vld [vmem:[%s791_s3 + $0x18] sm:$0xff] }
  0x20   :  { %455 = vmatprep.subr.mxu1 %v315_v50  ;;  %v296_v57 = vld [vmem:[%s791_s3 + $0x28] sm:$0xff]  ;;  %v309_v62 = vld [vmem:[%s791_s3 + $0x90] sm:$0xff]  ;;  %v307_v2 = vld [vmem:[%s791_s3 + $0x80] sm:$0xff] }
  0x21   :  { %456 = vmatpush3.msra.mxu1 %v299_v51  ;;  %v293_v63 = vld [vmem:[%s791_s3 + $0x10] sm:$0xff]  ;;  %v308_v0 = vld [vmem:[%s791_s3 + $0x88] sm:$0xff]  ;;  %v291_v3 = vld [vmem:[%s791_s3] sm:$0xff] }
  0x22   :  { %258 = vmatpush1.bf16.msra.mxu0 %v495_v11  ;;  %457 = vmatprep.subr.mxu1 %v314_v52  ;;  %v292_v1 = vld [vmem:[%s791_s3 + $0x8] sm:$0xff]  ;;  %v75_v7 = vld [vmem:[%s790_s2] sm:$0x3] }
  0x23   :  { %259 = vmatprep.subr.bf16.mxu0 %v496_v12  ;;  %458 = vmatpush3.msra.mxu1 %v298_v53  ;;  %v80_v9 = vrot.slane %v75_v7, %v79_v6  ;;  %v84_v10 = vrot.slane %v75_v7, %v83_v8 }
  0x24   :  { %459 = vmatprep.subr.mxu1 %v313_v54 }
  0x25   :  { %460 = vmatpush3.msra.mxu1 %v297_v55 }
  0x26   :  { %260 = vmatpush1.bf16.msra.mxu0 %v498_v17  ;;  %461 = vmatprep.subr.mxu1 %v312_v56 }
  0x27   :  { %261 = vmatprep.subr.bf16.mxu0 %v499_v19  ;;  %462 = vmatpush3.msra.mxu1 %v296_v57  ;;  %v553_v19 = vmov 0.0  }
  0x28   :  { %463 = vmatprep.subr.mxu1 %v311_v58  ;;  %38 = vst.msk [vmem:[#allocation2] sm:$0xff] %vm37_vm0, %v553_v19 }
  0x29   :  { %464 = vmatpush3.msra.mxu1 %v295_v59 }
  0x2a   :  { %262 = vmatpush1.bf16.msra.mxu0 %v501_v23  ;;  %465 = vmatprep.subr.mxu1 %v310_v60 }
  0x2b   :  { %263 = vmatprep.subr.bf16.mxu0 %v502_v25  ;;  %466 = vmatpush3.msra.mxu1 %v294_v61  ;;  %v401_v25 = vstv %s792_s4 }
  0x2c   :  { %467 = vmatprep.subr.mxu1 %v309_v62 }
  0x2d   :  { %468 = vmatpush3.msra.mxu1 %v293_v63 }
  0x2e   :  { %264 = vmatpush2.bf16.msra.mxu0 %v504_v29  ;;  %469 = vmatprep.subr.mxu1 %v308_v0 }
  0x2f   :  { %265 = vmatprep.subr.bf16.mxu0 %v505_v31  ;;  %470 = vmatpush3.msra.mxu1 %v292_v1  ;;  %v290_v21 = vld [vmem:[#allocation2] sm:$0xff] }
  0x30   :  { %471 = vmatprep.subr.mxu1 %v307_v2 }
  0x31   :  { %472 = vmatpush3.msra.mxu1 %v291_v3 }
  0x32   :  { %266 = vmatpush2.bf16.msra.mxu0 %v507_v33 }
  0x33   :  { %267 = vmatprep.subr.bf16.mxu0 %v508_v34 }
  0x36   :  { %268 = vmatpush2.bf16.msra.mxu0 %v510_v35 }
  0x37   :  { %269 = vmatprep.subr.bf16.mxu0 %v511_v36 }
  0x3a   :  { %270 = vmatpush2.bf16.msra.mxu0 %v513_v37 }
  0x3b   :  { %271 = vmatprep.subr.bf16.mxu0 %v514_v38 }
  0x3e   :  { %272 = vmatpush2.bf16.msra.mxu0 %v516_v39 }
  0x3f   :  { %273 = vmatprep.subr.bf16.mxu0 %v517_v40 }
  0x42   :  { %274 = vmatpush2.bf16.msra.mxu0 %v519_v41 }
  0x43   :  { %275 = vmatprep.subr.bf16.mxu0 %v520_v42 }
  0x46   :  { %276 = vmatpush2.bf16.msra.mxu0 %v522_v43 }
  0x47   :  { %277 = vmatprep.subr.bf16.mxu0 %v523_v44 }
  0x4a   :  { %278 = vmatpush2.bf16.msra.mxu0 %v525_v45 }
  0x4d   :  { %280 = vmatmul.mubr.bf16.vlgmr.msra.gmra.mxu0 %v41_v47 }
 0x10d   :  { %v281_v11 = vpop.f32.mrf.mxu0 }
 0x10e   :  { %v282_v12 = vadd.f32 %v281_v11, %v80_v9 }
 0x10f   :  { %v283_v13 = vpop.f32.mrf.mxu0 }
 0x110   :  { %v284_v14 = vadd.f32 %v283_v13, %v84_v10 }
 0x111   :  { %v285_v15 = vpop.f32.mrf.mxu0 }
 0x112   :  { %526 = vtanh.f32 %v284_v14 }
 0x113   :  { %528 = vtanh.f32 %v282_v12  ;;  %v286_v16 = vpop.f32.mrf.mxu0 }
 0x11f   :  { %v527_v17 = vpop.eup %526 }
 0x120   :  { %v529_v18 = vpop.eup %528  ;;  %387 = vmatprep.mubr.f32.mxu1 %v527_v17 }
 0x121   :  { %388 = vmatmul.mubr.f32.vlgmr.msra.gmra.mxu1 %v529_v18 }
 0x1e1   :  { %v473_v20 = vpop.f32.mrf.mxu1 }
 0x1e3   :  { %v474_v22 = vpop.f32.mrf.mxu1 }
 0x1e4   :  { %v475_v23 = vadd.f32 %v474_v22, %v473_v20 }
 0x1e6   :  { %v393_v24 = vadd.f32 %v475_v23, %v290_v21 }
 0x1e8   :  { %395 = vst.msk [vmem:[#allocation2] sm:$0xff] %vm37_vm0, %v393_v24 }
 0x1ef   :  { %v399_v26 = vld [vmem:[#allocation2] sm:$0xff] }
 0x1f0   :  { %v402_v27 = vadd.f32 %v401_v25, %v399_v26 }
 0x1f2   :  { %403 = vst.msk [vmem:[%s793_s5] sm:$0xff] %vm37_vm0, %v402_v27 }
 0x1f3   :  { %408 = vsyncpa [#allocation5], 1 }

</bundles_post_ra>
